<compile_context>
chip_gen: v7x
topology: tpu7x:2x2x1
jax: 0.10.0
libtpu: 0.0.40
codegen_flags: <defaults>
</compile_context>

<pallas_src>
import functools
import math

import jax
import jax.numpy as jnp
from jax.experimental import pallas as pl
from jax.experimental.pallas import tpu as pltpu

BN_EPS = 1e-5


# --------------------------------- kernel -----------------------------------
def _residual_kernel(use_1x1conv, butterfly_bn, H, cout, *refs):
    """Fused Residual forward.

    refs (in order):
      x      : (N*H, W*Cin)          activations, lane-fused (w, c)
      bw1    : (3*W*Cin,  W*Cout)    K-stacked banded conv1 weights (dy = 0,1,2)
      g1, be1: (1, W*Cout)           lane-tiled BN1 gamma / beta
      bw2    : (3*W*Cout, W*Cout)    K-stacked banded conv2 weights
      g2, be2: (1, W*Cout)           lane-tiled BN2 gamma / beta
      [p]    : (W*Cout, W*Cout)      fused BN fold matrix (only if W not pow2)
      [w3,b3]: (W*Cin, W*Cout), (1, W*Cout)   1x1 shortcut (only if use_1x1conv)
      o      : (N*H, W*Cout)         output
    """
    refs = list(refs)
    x_ref, bw1_ref, g1_ref, be1_ref, bw2_ref, g2_ref, be2_ref = refs[:7]
    rest = refs[7:]
    o_ref = rest.pop()
    p_ref = rest.pop(0) if not butterfly_bn else None
    if use_1x1conv:
        w3_ref, b3_ref = rest[0], rest[1]

    x = x_ref[...]
    nh = x.shape[0]
    cdt = x.dtype

    # Border masks for the vertical shifts: zero rows with h == 0 / h == H-1.
    # (These rows are exactly where pltpu.roll would wrap across image/batch
    #  boundaries, so masking also guarantees no cross-image leakage.)
    h_idx = jax.lax.broadcasted_iota(jnp.int32, (nh, 1), 0) % H
    mask_up = (h_idx > 0).astype(cdt)
    mask_dn = (h_idx < H - 1).astype(cdt)

    def conv3x3(act, bw_ref):
        # vertical +/-1 row shifts via XLU roll (sublane axis) + border mask
        up = pltpu.roll(act, shift=1, axis=0) * mask_up              # row h <- h-1
        dn = pltpu.roll(act, shift=nh - 1, axis=0) * mask_dn         # row h <- h+1
        stacked = jnp.concatenate([up, act, dn], axis=1)             # (NH, 3*W*Cin)
        # single MXU matmul per conv: K accumulates all 3 dy slabs inside the MXU
        return jnp.dot(stacked, bw_ref[...], preferred_element_type=jnp.float32)

    def batchnorm(y, g_lane, b_lane):
        wc = y.shape[1]
        w = wc // cout
        inv_n = 1.0 / float(y.shape[0] * w)                          # N*H*W per channel
        colsum = jnp.sum(y, axis=0, keepdims=True)                   # (1, W*C)
        colsq = jnp.sum(y * y, axis=0, keepdims=True)                # (1, W*C)
        stats = jnp.concatenate([colsum, colsq], axis=0)             # (2, W*C)
        if butterfly_bn:
            # log2(W) lane-roll butterfly: per-channel totals, already lane-replicated
            step = cout
            while step < wc:
                stats = stats + pltpu.roll(stats, shift=step, axis=1)
                step *= 2
        else:
            stats = jnp.dot(stats, p_ref[...], preferred_element_type=jnp.float32)
        mean = stats[0:1, :] * inv_n
        ex2 = stats[1:2, :] * inv_n
        var = jnp.maximum(ex2 - mean * mean, 0.0)                    # clamp cancellation
        scale = g_lane * jax.lax.rsqrt(var + BN_EPS)                 # rsqrt -> EUP slot
        shift = b_lane - mean * scale
        return y * scale + shift

    # Y = relu(BN1(conv1(X)))   (conv1 bias dropped: cancelled exactly by BN1)
    y = conv3x3(x, bw1_ref)
    y = jnp.maximum(batchnorm(y, g1_ref[...], be1_ref[...]), 0.0)
    # Y = BN2(conv2(Y))         (conv2 bias dropped: cancelled exactly by BN2)
    y = conv3x3(y.astype(cdt), bw2_ref)
    y = batchnorm(y, g2_ref[...], be2_ref[...])
    # shortcut
    if use_1x1conv:
        sc = jnp.dot(x, w3_ref[...], preferred_element_type=jnp.float32) + b3_ref[...]
    else:
        sc = x.astype(jnp.float32)                                   # requires Cin == Cout
    o_ref[...] = jnp.maximum(y + sc, 0.0)


# ----------------------- wrapper-side layout plumbing ------------------------
def _banded_conv_weights(w_hwio, W):
    """(3,3,Cin,Cout) HWIO -> (3*W*Cin, W*Cout) K-stacked banded matrices.

    Slab dy=0 multiplies the h-1 shifted rows, dy=1 the unshifted rows, dy=2 the
    h+1 shifted rows; the horizontal taps (dx, padding=1) are folded into the
    band structure over the fused (w, c) lane axis.
    """
    kh, kw, _, _ = w_hwio.shape
    w = jnp.asarray(w_hwio, jnp.float32)
    slabs = []
    for dy in range(kh):
        acc = None
        for dx in range(kw):
            # output column w reads input column w + dx - 1 (borders dropped)
            term = jnp.kron(jnp.eye(W, k=1 - dx, dtype=jnp.float32), w[dy, dx])
            acc = term if acc is None else acc + term
        slabs.append(acc)
    return jnp.concatenate(slabs, axis=0)


def _lane_tile(v, W, C):
    """Per-channel vector -> (1, W*C) lane-tiled vector (lane = w*C + c)."""
    return jnp.tile(jnp.asarray(v, jnp.float32).reshape(1, C), (1, W))


def _is_pow2(n):
    return n > 0 and (n & (n - 1)) == 0


@functools.partial(jax.jit, static_argnames=("use_1x1conv", "stride", "compute_dtype"))
def residual_forward(x_nchw, params, *, use_1x1conv=False, stride=1,
                     compute_dtype=jnp.float32):
    """Pallas implementation of Residual.forward.  Input/output are NCHW (like PyTorch).

    compute_dtype: dtype of activations / conv weights fed to the MXU.  bf16 gives
    ~3x MXU throughput and halves weight DMA, but changes numerics — keep f32 unless
    the caller's tolerance has been re-validated.  BN statistics and all accumulation
    stay in f32 regardless.
    """
    if stride != 1:
        # TODO(synk): strided conv1/conv3 (stride > 1) not implemented in-kernel;
        # the module default stride=1 is fully supported.
        raise NotImplementedError("stride > 1 not implemented")

    N, cin, H, W = x_nchw.shape
    cout = params["w1"].shape[-1]
    if not use_1x1conv and cin != cout:
        raise ValueError("use_1x1conv=False requires in_channels == out_channels")

    # NCHW -> NHWC -> (N*H, W*Cin) lane-fused; layout plumbing done once by XLA.
    x = jnp.transpose(x_nchw, (0, 2, 3, 1)).reshape(N * H, W * cin).astype(compute_dtype)

    bw1 = _banded_conv_weights(params["w1"], W).astype(compute_dtype)   # (3*W*cin,  W*cout)
    bw2 = _banded_conv_weights(params["w2"], W).astype(compute_dtype)   # (3*W*cout, W*cout)
    g1l = _lane_tile(params["g1"], W, cout)
    be1l = _lane_tile(params["be1"], W, cout)
    g2l = _lane_tile(params["g2"], W, cout)
    be2l = _lane_tile(params["be2"], W, cout)

    butterfly_bn = _is_pow2(W)
    args = [x, bw1, g1l, be1l, bw2, g2l, be2l]
    if not butterfly_bn:
        # fallback: fused per-channel fold matrix (one matmul per BN)
        p_mat = jnp.kron(jnp.ones((W, W), jnp.float32), jnp.eye(cout, dtype=jnp.float32))
        args.append(p_mat)
    if use_1x1conv:   # only DMA the 1x1-conv weights when they are actually used
        w3big = jnp.kron(jnp.eye(W, dtype=jnp.float32),
                         jnp.asarray(params["w3"], jnp.float32)).astype(compute_dtype)
        b3l = _lane_tile(params["b3"], W, cout)
        args += [w3big, b3l]

    # VMEM budget from the actual footprint (inputs + output) with headroom,
    # clamped to v7x's 64 MiB physical ceiling (safe on v5e/v6e too).
    total_bytes = sum(math.prod(a.shape) * jnp.dtype(a.dtype).itemsize for a in args)
    total_bytes += N * H * W * cout * 4
    vmem_limit = int(min(max(3 * total_bytes + (4 << 20), 16 << 20), 64 << 20))

    kernel = functools.partial(_residual_kernel, use_1x1conv, butterfly_bn, H, cout)
    vspec = pl.BlockSpec(memory_space=pltpu.MemorySpace.VMEM)

    # TODO(synk): for large N*H (and to use both v7x TensorCores) tile the row axis
    # with a "parallel" grid plus a two-pass BN-statistics reduction; at these shapes
    # a single lane-dense block fits comfortably in VMEM, so the call stays gridless.
    out = pl.pallas_call(
        kernel,
        out_shape=jax.ShapeDtypeStruct((N * H, W * cout), jnp.float32),
        in_specs=[vspec] * len(args),
        out_specs=vspec,
        compiler_params=pltpu.CompilerParams(vmem_limit_bytes=vmem_limit),
    )(*args)

    return jnp.transpose(out.reshape(N, H, W, cout), (0, 3, 1, 2))    # back to NCHW


# ------------------------------ pure-JAX reference ---------------------------
def _residual_ref_nchw(x_nchw, p, use_1x1conv):
    x = jnp.transpose(x_nchw, (0, 2, 3, 1)).astype(jnp.float32)

    def conv3x3(x, w, b):
        y = jax.lax.conv_general_dilated(
            x, w, window_strides=(1, 1), padding="SAME",
            dimension_numbers=("NHWC", "HWIO", "NHWC"))
        return y + b.reshape(1, 1, 1, -1)

    def bn(y, g, be):
        mean = jnp.mean(y, axis=(0, 1, 2), keepdims=True)
        var = jnp.mean(jnp.square(y - mean), axis=(0, 1, 2), keepdims=True)
        return ((y - mean) * jax.lax.rsqrt(var + BN_EPS) * g.reshape(1, 1, 1, -1)
                + be.reshape(1, 1, 1, -1))

    y = jax.nn.relu(bn(conv3x3(x, p["w1"], p["b1"]), p["g1"], p["be1"]))
    y = bn(conv3x3(y, p["w2"], p["b2"]), p["g2"], p["be2"])
    if use_1x1conv:
        x = jnp.einsum("nhwc,cd->nhwd", x, p["w3"]) + p["b3"].reshape(1, 1, 1, -1)
    out = jax.nn.relu(y + x)
    return jnp.transpose(out, (0, 3, 1, 2))


if __name__ == "__main__":
    # --- test 1: projection shortcut (use_1x1conv=True), Cin != Cout ---------
    N, CIN, COUT, H, W = 2, 4, 8, 16, 16            # W * COUT == 128 (lane-dense output)
    ks = jax.random.split(jax.random.PRNGKey(0), 12)
    x_nchw = jax.random.normal(ks[0], (N, CIN, H, W), jnp.float32)
    params = {
        "w1": 0.2 * jax.random.normal(ks[1], (3, 3, CIN, COUT), jnp.float32),
        "b1": 0.1 * jax.random.normal(ks[2], (1, COUT), jnp.float32),
        "g1": 1.0 + 0.1 * jax.random.normal(ks[3], (1, COUT), jnp.float32),
        "be1": 0.1 * jax.random.normal(ks[4], (1, COUT), jnp.float32),
        "w2": 0.2 * jax.random.normal(ks[5], (3, 3, COUT, COUT), jnp.float32),
        "b2": 0.1 * jax.random.normal(ks[6], (1, COUT), jnp.float32),
        "g2": 1.0 + 0.1 * jax.random.normal(ks[7], (1, COUT), jnp.float32),
        "be2": 0.1 * jax.random.normal(ks[8], (1, COUT), jnp.float32),
        "w3": 0.2 * jax.random.normal(ks[9], (CIN, COUT), jnp.float32),
        "b3": 0.1 * jax.random.normal(ks[10], (1, COUT), jnp.float32),
    }
    out = jax.block_until_ready(residual_forward(x_nchw, params, use_1x1conv=True))
    assert out.shape == (N, COUT, H, W), out.shape
    ref = _residual_ref_nchw(x_nchw, params, use_1x1conv=True)
    err = float(jnp.max(jnp.abs(out - ref)))
    assert err < 2e-3, f"use_1x1conv=True: max abs err = {err}"

    # --- test 2: identity shortcut (use_1x1conv=False), Cin == Cout ----------
    C = 8
    ks2 = jax.random.split(jax.random.PRNGKey(1), 10)
    x2 = jax.random.normal(ks2[0], (N, C, H, W), jnp.float32)
    params2 = {
        "w1": 0.2 * jax.random.normal(ks2[1], (3, 3, C, C), jnp.float32),
        "b1": 0.1 * jax.random.normal(ks2[2], (1, C), jnp.float32),
        "g1": 1.0 + 0.1 * jax.random.normal(ks2[3], (1, C), jnp.float32),
        "be1": 0.1 * jax.random.normal(ks2[4], (1, C), jnp.float32),
        "w2": 0.2 * jax.random.normal(ks2[5], (3, 3, C, C), jnp.float32),
        "b2": 0.1 * jax.random.normal(ks2[6], (1, C), jnp.float32),
        "g2": 1.0 + 0.1 * jax.random.normal(ks2[7], (1, C), jnp.float32),
        "be2": 0.1 * jax.random.normal(ks2[8], (1, C), jnp.float32),
    }
    out2 = jax.block_until_ready(residual_forward(x2, params2, use_1x1conv=False))
    ref2 = _residual_ref_nchw(x2, params2, use_1x1conv=False)
    err2 = float(jnp.max(jnp.abs(out2 - ref2)))
    assert err2 < 2e-3, f"use_1x1conv=False: max abs err = {err2}"

    print("KERNEL_OK")
</pallas_src>

<mosaic_0001>
module attributes {stable_mosaic.version = 11 : i64} {
  func.func @_residual_kernel(%arg0: memref<32x64xf32, #tpu.memory_space<vmem>>, %arg1: memref<192x128xf32, #tpu.memory_space<vmem>>, %arg2: memref<1x128xf32, #tpu.memory_space<vmem>>, %arg3: memref<1x128xf32, #tpu.memory_space<vmem>>, %arg4: memref<384x128xf32, #tpu.memory_space<vmem>>, %arg5: memref<1x128xf32, #tpu.memory_space<vmem>>, %arg6: memref<1x128xf32, #tpu.memory_space<vmem>>, %arg7: memref<64x128xf32, #tpu.memory_space<vmem>>, %arg8: memref<1x128xf32, #tpu.memory_space<vmem>>, %arg9: memref<32x128xf32, #tpu.memory_space<vmem>>) attributes {dimension_semantics = [], scalar_prefetch = 0 : i64, scratch_operands = 0 : i64, tpu.core_type = #tpu.core_type<tc>} {
    %c0 = arith.constant 0 : index
    %c0_0 = arith.constant 0 : index
    %0 = vector.load %arg0[%c0, %c0_0] : memref<32x64xf32, #tpu.memory_space<vmem>>, vector<32x64xf32>
    %1 = tpu.iota {dimensions = array<i32: 0>} : vector<32x1xi32>
    %c16_i32 = arith.constant 16 : i32
    %c0_i32 = arith.constant 0 : i32
    %2 = arith.cmpi eq, %c16_i32, %c0_i32 : i32
    %c1_i32 = arith.constant 1 : i32
    %3 = arith.select %2, %c1_i32, %c16_i32 : i32
    %4 = vector.broadcast %3 : i32 to vector<32x1xi32>
    %5 = arith.remsi %1, %4 : vector<32x1xi32>
    %c0_i32_1 = arith.constant 0 : i32
    %6 = vector.broadcast %c0_i32_1 : i32 to vector<32x1xi32>
    %7 = arith.cmpi ne, %5, %6 : vector<32x1xi32>
    %c0_i32_2 = arith.constant 0 : i32
    %8 = vector.broadcast %c0_i32_2 : i32 to vector<32x1xi32>
    %9 = arith.cmpi slt, %5, %8 : vector<32x1xi32>
    %c0_i32_3 = arith.constant 0 : i32
    %10 = arith.cmpi slt, %3, %c0_i32_3 : i32
    %11 = vector.broadcast %10 : i1 to vector<32x1xi1>
    %12 = vector.broadcast %11 : vector<32x1xi1> to vector<32x1xi1>
    %13 = arith.xori %9, %12 : vector<32x1xi1>
    %14 = arith.andi %13, %7 : vector<32x1xi1>
    %15 = vector.broadcast %3 : i32 to vector<32x1xi32>
    %16 = arith.addi %5, %15 : vector<32x1xi32>
    %17 = arith.select %14, %16, %5 : vector<32x1xi1>, vector<32x1xi32>
    %c0_i32_4 = arith.constant 0 : i32
    %18 = vector.broadcast %c0_i32_4 : i32 to vector<32x1xi32>
    %19 = arith.cmpi sgt, %17, %18 : vector<32x1xi32>
    %20 = arith.extui %19 : vector<32x1xi1> to vector<32x1xi32>
    %21 = arith.sitofp %20 : vector<32x1xi32> to vector<32x1xf32>
    %c15_i32 = arith.constant 15 : i32
    %22 = vector.broadcast %c15_i32 : i32 to vector<32x1xi32>
    %23 = arith.cmpi slt, %17, %22 : vector<32x1xi32>
    %24 = arith.extui %23 : vector<32x1xi1> to vector<32x1xi32>
    %25 = arith.sitofp %24 : vector<32x1xi32> to vector<32x1xf32>
    %c1_i32_5 = arith.constant 1 : i32
    %26 = tpu.dynamic_rotate %0 by %c1_i32_5 dim 0 : vector<32x64xf32>, i32 -> vector<32x64xf32>
    %27 = vector.broadcast %21 : vector<32x1xf32> to vector<32x64xf32>
    %28 = arith.mulf %26, %27 : vector<32x64xf32>
    %c31_i32 = arith.constant 31 : i32
    %29 = tpu.dynamic_rotate %0 by %c31_i32 dim 0 : vector<32x64xf32>, i32 -> vector<32x64xf32>
    %30 = vector.broadcast %25 : vector<32x1xf32> to vector<32x64xf32>
    %31 = arith.mulf %29, %30 : vector<32x64xf32>
    %32 = tpu.concatenate %28, %0, %31 in 1 : vector<32x64xf32>, vector<32x64xf32>, vector<32x64xf32> -> vector<32x192xf32>
    %c0_6 = arith.constant 0 : index
    %c0_7 = arith.constant 0 : index
    %33 = vector.load %arg1[%c0_6, %c0_7] : memref<192x128xf32, #tpu.memory_space<vmem>>, vector<192x128xf32>
    %cst = arith.constant dense<0.000000e+00> : vector<32x128xf32>
    %34 = tpu.matmul %32, %33, %cst {dimension_numbers = #tpu.dot_dimension_numbers<[1], [0], [0], [1], [0, 0, 1, 1], [], []>} : vector<32x192xf32>, vector<192x128xf32>, vector<32x128xf32> -> vector<32x128xf32>
    %c0_8 = arith.constant 0 : index
    %c0_9 = arith.constant 0 : index
    %35 = vector.load %arg2[%c0_8, %c0_9] : memref<1x128xf32, #tpu.memory_space<vmem>>, vector<1x128xf32>
    %c0_10 = arith.constant 0 : index
    %c0_11 = arith.constant 0 : index
    %36 = vector.load %arg3[%c0_10, %c0_11] : memref<1x128xf32, #tpu.memory_space<vmem>>, vector<1x128xf32>
    %cst_12 = arith.constant dense<0.000000e+00> : vector<128xf32>
    %37 = vector.multi_reduction <add>, %34, %cst_12 [0] : vector<32x128xf32> to vector<128xf32>
    %38 = vector.shape_cast %37 : vector<128xf32> to vector<1x128xf32>
    %39 = arith.mulf %34, %34 : vector<32x128xf32>
    %cst_13 = arith.constant dense<0.000000e+00> : vector<128xf32>
    %40 = vector.multi_reduction <add>, %39, %cst_13 [0] : vector<32x128xf32> to vector<128xf32>
    %41 = vector.shape_cast %40 : vector<128xf32> to vector<1x128xf32>
    %42 = tpu.concatenate %38, %41 in 0 : vector<1x128xf32>, vector<1x128xf32> -> vector<2x128xf32>
    %c8_i32 = arith.constant 8 : i32
    %43 = tpu.dynamic_rotate %42 by %c8_i32 dim 1 : vector<2x128xf32>, i32 -> vector<2x128xf32>
    %44 = arith.addf %42, %43 : vector<2x128xf32>
    %c16_i32_14 = arith.constant 16 : i32
    %45 = tpu.dynamic_rotate %44 by %c16_i32_14 dim 1 : vector<2x128xf32>, i32 -> vector<2x128xf32>
    %46 = arith.addf %44, %45 : vector<2x128xf32>
    %c32_i32 = arith.constant 32 : i32
    %47 = tpu.dynamic_rotate %46 by %c32_i32 dim 1 : vector<2x128xf32>, i32 -> vector<2x128xf32>
    %48 = arith.addf %46, %47 : vector<2x128xf32>
    %c64_i32 = arith.constant 64 : i32
    %49 = tpu.dynamic_rotate %48 by %c64_i32 dim 1 : vector<2x128xf32>, i32 -> vector<2x128xf32>
    %50 = arith.addf %48, %49 : vector<2x128xf32>
    %51 = vector.extract_strided_slice %50 {offsets = [0, 0], sizes = [1, 128], strides = [1, 1]} : vector<2x128xf32> to vector<1x128xf32>
    %cst_15 = arith.constant 0.001953125 : f32
    %52 = vector.broadcast %cst_15 : f32 to vector<1x128xf32>
    %53 = arith.mulf %51, %52 : vector<1x128xf32>
    %54 = vector.extract_strided_slice %50 {offsets = [1, 0], sizes = [1, 128], strides = [1, 1]} : vector<2x128xf32> to vector<1x128xf32>
    %cst_16 = arith.constant 0.001953125 : f32
    %55 = vector.broadcast %cst_16 : f32 to vector<1x128xf32>
    %56 = arith.mulf %54, %55 : vector<1x128xf32>
    %57 = arith.mulf %53, %53 : vector<1x128xf32>
    %58 = arith.subf %56, %57 : vector<1x128xf32>
    %cst_17 = arith.constant 0.000000e+00 : f32
    %59 = vector.broadcast %cst_17 : f32 to vector<1x128xf32>
    %60 = arith.maximumf %58, %59 : vector<1x128xf32>
    %cst_18 = arith.constant 9.99999974E-6 : f32
    %61 = vector.broadcast %cst_18 : f32 to vector<1x128xf32>
    %62 = arith.addf %60, %61 : vector<1x128xf32>
    %63 = math.rsqrt %62 : vector<1x128xf32>
    %64 = arith.mulf %35, %63 : vector<1x128xf32>
    %65 = arith.mulf %53, %64 : vector<1x128xf32>
    %66 = arith.subf %36, %65 : vector<1x128xf32>
    %67 = vector.broadcast %64 : vector<1x128xf32> to vector<32x128xf32>
    %68 = arith.mulf %34, %67 : vector<32x128xf32>
    %69 = vector.broadcast %66 : vector<1x128xf32> to vector<32x128xf32>
    %70 = arith.addf %68, %69 : vector<32x128xf32>
    %cst_19 = arith.constant 0.000000e+00 : f32
    %71 = vector.broadcast %cst_19 : f32 to vector<32x128xf32>
    %72 = arith.maximumf %70, %71 : vector<32x128xf32>
    %c1_i32_20 = arith.constant 1 : i32
    %73 = tpu.dynamic_rotate %72 by %c1_i32_20 dim 0 : vector<32x128xf32>, i32 -> vector<32x128xf32>
    %74 = vector.broadcast %21 : vector<32x1xf32> to vector<32x128xf32>
    %75 = arith.mulf %73, %74 : vector<32x128xf32>
    %c31_i32_21 = arith.constant 31 : i32
    %76 = tpu.dynamic_rotate %72 by %c31_i32_21 dim 0 : vector<32x128xf32>, i32 -> vector<32x128xf32>
    %77 = vector.broadcast %25 : vector<32x1xf32> to vector<32x128xf32>
    %78 = arith.mulf %76, %77 : vector<32x128xf32>
    %79 = tpu.concatenate %75, %72, %78 in 1 : vector<32x128xf32>, vector<32x128xf32>, vector<32x128xf32> -> vector<32x384xf32>
    %c0_22 = arith.constant 0 : index
    %c0_23 = arith.constant 0 : index
    %80 = vector.load %arg4[%c0_22, %c0_23] : memref<384x128xf32, #tpu.memory_space<vmem>>, vector<384x128xf32>
    %cst_24 = arith.constant dense<0.000000e+00> : vector<32x128xf32>
    %81 = tpu.matmul %79, %80, %cst_24 {dimension_numbers = #tpu.dot_dimension_numbers<[1], [0], [0], [1], [0, 0, 1, 1], [], []>} : vector<32x384xf32>, vector<384x128xf32>, vector<32x128xf32> -> vector<32x128xf32>
    %c0_25 = arith.constant 0 : index
    %c0_26 = arith.constant 0 : index
    %82 = vector.load %arg5[%c0_25, %c0_26] : memref<1x128xf32, #tpu.memory_space<vmem>>, vector<1x128xf32>
    %c0_27 = arith.constant 0 : index
    %c0_28 = arith.constant 0 : index
    %83 = vector.load %arg6[%c0_27, %c0_28] : memref<1x128xf32, #tpu.memory_space<vmem>>, vector<1x128xf32>
    %cst_29 = arith.constant dense<0.000000e+00> : vector<128xf32>
    %84 = vector.multi_reduction <add>, %81, %cst_29 [0] : vector<32x128xf32> to vector<128xf32>
    %85 = vector.shape_cast %84 : vector<128xf32> to vector<1x128xf32>
    %86 = arith.mulf %81, %81 : vector<32x128xf32>
    %cst_30 = arith.constant dense<0.000000e+00> : vector<128xf32>
    %87 = vector.multi_reduction <add>, %86, %cst_30 [0] : vector<32x128xf32> to vector<128xf32>
    %88 = vector.shape_cast %87 : vector<128xf32> to vector<1x128xf32>
    %89 = tpu.concatenate %85, %88 in 0 : vector<1x128xf32>, vector<1x128xf32> -> vector<2x128xf32>
    %c8_i32_31 = arith.constant 8 : i32
    %90 = tpu.dynamic_rotate %89 by %c8_i32_31 dim 1 : vector<2x128xf32>, i32 -> vector<2x128xf32>
    %91 = arith.addf %89, %90 : vector<2x128xf32>
    %c16_i32_32 = arith.constant 16 : i32
    %92 = tpu.dynamic_rotate %91 by %c16_i32_32 dim 1 : vector<2x128xf32>, i32 -> vector<2x128xf32>
    %93 = arith.addf %91, %92 : vector<2x128xf32>
    %c32_i32_33 = arith.constant 32 : i32
    %94 = tpu.dynamic_rotate %93 by %c32_i32_33 dim 1 : vector<2x128xf32>, i32 -> vector<2x128xf32>
    %95 = arith.addf %93, %94 : vector<2x128xf32>
    %c64_i32_34 = arith.constant 64 : i32
    %96 = tpu.dynamic_rotate %95 by %c64_i32_34 dim 1 : vector<2x128xf32>, i32 -> vector<2x128xf32>
    %97 = arith.addf %95, %96 : vector<2x128xf32>
    %98 = vector.extract_strided_slice %97 {offsets = [0, 0], sizes = [1, 128], strides = [1, 1]} : vector<2x128xf32> to vector<1x128xf32>
    %cst_35 = arith.constant 0.001953125 : f32
    %99 = vector.broadcast %cst_35 : f32 to vector<1x128xf32>
    %100 = arith.mulf %98, %99 : vector<1x128xf32>
    %101 = vector.extract_strided_slice %97 {offsets = [1, 0], sizes = [1, 128], strides = [1, 1]} : vector<2x128xf32> to vector<1x128xf32>
    %cst_36 = arith.constant 0.001953125 : f32
    %102 = vector.broadcast %cst_36 : f32 to vector<1x128xf32>
    %103 = arith.mulf %101, %102 : vector<1x128xf32>
    %104 = arith.mulf %100, %100 : vector<1x128xf32>
    %105 = arith.subf %103, %104 : vector<1x128xf32>
    %cst_37 = arith.constant 0.000000e+00 : f32
    %106 = vector.broadcast %cst_37 : f32 to vector<1x128xf32>
    %107 = arith.maximumf %105, %106 : vector<1x128xf32>
    %cst_38 = arith.constant 9.99999974E-6 : f32
    %108 = vector.broadcast %cst_38 : f32 to vector<1x128xf32>
    %109 = arith.addf %107, %108 : vector<1x128xf32>
    %110 = math.rsqrt %109 : vector<1x128xf32>
    %111 = arith.mulf %82, %110 : vector<1x128xf32>
    %112 = arith.mulf %100, %111 : vector<1x128xf32>
    %113 = arith.subf %83, %112 : vector<1x128xf32>
    %114 = vector.broadcast %111 : vector<1x128xf32> to vector<32x128xf32>
    %115 = arith.mulf %81, %114 : vector<32x128xf32>
    %116 = vector.broadcast %113 : vector<1x128xf32> to vector<32x128xf32>
    %117 = arith.addf %115, %116 : vector<32x128xf32>
    %c0_39 = arith.constant 0 : index
    %c0_40 = arith.constant 0 : index
    %118 = vector.load %arg7[%c0_39, %c0_40] : memref<64x128xf32, #tpu.memory_space<vmem>>, vector<64x128xf32>
    %cst_41 = arith.constant dense<0.000000e+00> : vector<32x128xf32>
    %119 = tpu.matmul %0, %118, %cst_41 {dimension_numbers = #tpu.dot_dimension_numbers<[1], [0], [0], [1], [0, 0, 1, 1], [], []>} : vector<32x64xf32>, vector<64x128xf32>, vector<32x128xf32> -> vector<32x128xf32>
    %c0_42 = arith.constant 0 : index
    %c0_43 = arith.constant 0 : index
    %120 = vector.load %arg8[%c0_42, %c0_43] : memref<1x128xf32, #tpu.memory_space<vmem>>, vector<1x128xf32>
    %121 = vector.broadcast %120 : vector<1x128xf32> to vector<32x128xf32>
    %122 = arith.addf %119, %121 : vector<32x128xf32>
    %123 = arith.addf %117, %122 : vector<32x128xf32>
    %cst_44 = arith.constant 0.000000e+00 : f32
    %124 = vector.broadcast %cst_44 : f32 to vector<32x128xf32>
    %125 = arith.maximumf %123, %124 : vector<32x128xf32>
    %c0_45 = arith.constant 0 : index
    %c0_46 = arith.constant 0 : index
    %126 = vector.load %arg9[%c0_45, %c0_46] : memref<32x128xf32, #tpu.memory_space<vmem>>, vector<32x128xf32>
    tpu.vector_store %arg9[%c0_45, %c0_46], %125 {strides = array<i32>} : memref<32x128xf32, #tpu.memory_space<vmem>>, vector<32x128xf32>,
    return
  }
}

</mosaic_0001>

<bundles_post_ra>
// kernel: residual_forward.1
= control target key start
LH: loop header
LB: loop body
LE: loop exit
PB: predicated region body
PF: predicated region fallthrough
CT: control target
= control target key end

     0   :  { %v36_v0 = vlaneseq  ;;  %v1100_v3 = vmov 0.0|0.0   ;;  %s1101_s13 = smov 64   ;;  %vm155_vm0 = vcmask 523264   ;;  %v1102_v55 = vmov 0.0   ;;  %s1104_s24 = smov 16   ;;  %s1632_s0 = inlined_call_operand.vmem [shape: f32[32,64], index: 0, kind: input, shape index: {}]   ;;  %s1633_s1 = inlined_call_operand.vmem [shape: f32[192,128], index: 1, kind: input, shape index: {}]   ;;  %s1634_s4 = inlined_call_operand.vmem [shape: f32[384,128], index: 4, kind: input, shape index: {}]   ;;  %s1635_s2 = inlined_call_operand.vmem [shape: f32[1,128], index: 2, kind: input, shape index: {}]   ;;  %s1636_s3 = inlined_call_operand.vmem [shape: f32[1,128], index: 3, kind: input, shape index: {}]   ;;  %s1637_s7 = inlined_call_operand.vmem [shape: f32[64,128], index: 7, kind: input, shape index: {}]   ;;  %s1638_s5 = inlined_call_operand.vmem [shape: f32[1,128], index: 5, kind: input, shape index: {}]   ;;  %s1639_s6 = inlined_call_operand.vmem [shape: f32[1,128], index: 6, kind: input, shape index: {}]   ;;  %s1640_s8 = inlined_call_operand.vmem [shape: f32[1,128], index: 8, kind: input, shape index: {}]   ;;  %s1641_s9 = inlined_call_operand.vmem [shape: f32[32,128], index: 9, kind: output, shape index: {}]  }
   0x1   :  { %v1160_v1 = vld [vmem:[%s1632_s0] sm:$0xff]  ;;  %v1165_v2 = vld [vmem:[%s1632_s0 + $0x10] sm:$0xff]  ;;  %973 = vmatprep.subr.bf16.mxu0 %v1100_v3  ;;  %v1178_v5 = vld [vmem:[%s1632_s0 + $0x8] sm:$0xff]  ;;  %vm305_vm7 = vcmask 1040384   ;;  %s1105_s25 = smov 32  }
   0x2   :  { %143 = vrot.lane.b32.xlu0 %v1160_v1, %s1101_s13  ;;  %147 = vrot.lane.b32.xlu1 %v1165_v2, %s1101_s13  ;;  %v160_v4 = vld [vmem:[%s1633_s1] sm:$0xff]  ;;  %v1183_v6 = vld [vmem:[%s1632_s0 + $0x18] sm:$0xff]  ;;  %v1188_v8 = vshrl.u32 %v36_v0, 7  ;;  %v126_v12 = vrot.slane %v1160_v1, 1  ;;  %v127_v13 = vrot.slane %v1178_v5, 1  ;;  %v113_v50 = vrot.slane %v1160_v1, 7 }
   0x3   :  { %v161_v7 = vld [vmem:[%s1633_s1 + $0x8] sm:$0xff]  ;;  %v162_v10 = vld [vmem:[%s1633_s1 + $0x10] sm:$0xff]  ;;  %v163_v11 = vld [vmem:[%s1633_s1 + $0x18] sm:$0xff]  ;;  %v116_v51 = vrot.slane %v1183_v6, 7  ;;  %v128_v52 = vrot.slane %v1165_v2, 1  ;;  %v115_v58 = vrot.slane %v1165_v2, 7 }
   0x4   :  { %v974_v9 = vpack.c.bf16 %v161_v7, %v160_v4  ;;  %vm130_vm1 = vcmp.lt.s32.totalorder %v1188_v8, 7  ;;  %v977_v15 = vpack.c.bf16 %v163_v11, %v162_v10  ;;  %v164_v16 = vld [vmem:[%s1633_s1 + $0x20] sm:$0xff]  ;;  %v165_v17 = vld [vmem:[%s1633_s1 + $0x28] sm:$0xff]  ;;  %v166_v19 = vld [vmem:[%s1633_s1 + $0x30] sm:$0xff]  ;;  %v38_v46 = vadd.s32 8, %v1188_v8 }
   0x5   :  { %v133_v14 = vsel %vm130_vm1, %v126_v12, %v127_v13  ;;  %v980_v18 = vpack.c.bf16 %v165_v17, %v164_v16  ;;  %v167_v20 = vld [vmem:[%s1633_s1 + $0x38] sm:$0xff]  ;;  %v168_v22 = vld [vmem:[%s1633_s1 + $0x40] sm:$0xff]  ;;  %v169_v23 = vld [vmem:[%s1633_s1 + $0x48] sm:$0xff]  ;;  %v45_v47 = vand.u32 15, %v1188_v8  ;;  %v39_v49 = vadd.s32 16, %v1188_v8 }
   0x6   :  { %145 = vrot.lane.b32.xlu0 %v1178_v5, %s1101_s13  ;;  %149 = vrot.lane.b32.xlu1 %v1183_v6, %s1101_s13  ;;  %v983_v21 = vpack.c.bf16 %v167_v20, %v166_v19  ;;  %v986_v24 = vpack.c.bf16 %v169_v23, %v168_v22  ;;  %v170_v25 = vld [vmem:[%s1633_s1 + $0x50] sm:$0xff]  ;;  %v171_v26 = vld [vmem:[%s1633_s1 + $0x58] sm:$0xff]  ;;  %v52_v48 = vand.u32 15, %v38_v46  ;;  %vm117_vm3 = vcmp.lt.s32.totalorder %v1188_v8, 1 }
   0x7   :  { %975 = vmatpush1.bf16.msra.mxu0 %v974_v9  ;;  %828 = vmatprep.mubr.msk.f32.mxu0 %vm155_vm0, %v133_v14  ;;  %v989_v27 = vpack.c.bf16 %v171_v26, %v170_v25  ;;  %v172_v28 = vld [vmem:[%s1633_s1 + $0x60] sm:$0xff]  ;;  %v173_v29 = vld [vmem:[%s1633_s1 + $0x68] sm:$0xff]  ;;  %v174_v31 = vld [vmem:[%s1633_s1 + $0x70] sm:$0xff]  ;;  %vm89_vm2 = vcmp.gt.s32.totalorder %v45_v47, 0  ;;  %v59_v53 = vand.u32 15, %v39_v49  ;;  %v40_v54 = vadd.s32 24, %v1188_v8 }
   0x8   :  { %976 = vmatprep.subr.bf16.mxu0 %v1100_v3  ;;  %v992_v30 = vpack.c.bf16 %v173_v29, %v172_v28  ;;  %v175_v32 = vld [vmem:[%s1633_s1 + $0x78] sm:$0xff]  ;;  %v176_v34 = vld [vmem:[%s1633_s1 + $0x80] sm:$0xff]  ;;  %v177_v35 = vld [vmem:[%s1633_s1 + $0x88] sm:$0xff]  ;;  %vm102_vm4 = vcmp.lt.s32.totalorder %v52_v48, 15  ;;  %v1289_v56 = vsel %vm89_vm2, 1.0, %v1102_v55  ;;  %v121_v57 = vsel %vm117_vm3, %v116_v51, %v113_v50 }
   0x9   :  { %v995_v33 = vpack.c.bf16 %v175_v32, %v174_v31  ;;  %v998_v36 = vpack.c.bf16 %v177_v35, %v176_v34  ;;  %v178_v37 = vld [vmem:[%s1633_s1 + $0x90] sm:$0xff]  ;;  %v179_v38 = vld [vmem:[%s1633_s1 + $0x98] sm:$0xff]  ;;  %v180_v40 = vld [vmem:[%s1633_s1 + $0xa0] sm:$0xff]  ;;  %v1294_v59 = vsel %vm102_vm4, 1.0, %v1102_v55  ;;  %v132_v60 = vsel %vm130_vm1, %v127_v13, %v128_v52 }
   0xa   :  { %v1001_v39 = vpack.c.bf16 %v179_v38, %v178_v37  ;;  %v181_v41 = vld [vmem:[%s1633_s1 + $0xa8] sm:$0xff]  ;;  %v182_v43 = vld [vmem:[%s1633_s1 + $0xb0] sm:$0xff]  ;;  %v183_v44 = vld [vmem:[%s1633_s1 + $0xb8] sm:$0xff]  ;;  %v122_v61 = vmul.f32 %v1289_v56, %v121_v57  ;;  %vm91_vm5 = vcmp.gt.s32.totalorder %v59_v53, 0  ;;  %v66_v62 = vand.u32 15, %v40_v54  ;;  %s1103_s1 = smov 8  }
   0xb   :  { %978 = vmatpush1.bf16.msra.mxu0 %v977_v15  ;;  %v1004_v42 = vpack.c.bf16 %v181_v41, %v180_v40  ;;  %v1007_v45 = vpack.c.bf16 %v183_v44, %v182_v43  ;;  %v114_v63 = vrot.slane %v1178_v5, 7  ;;  %v136_v0 = vmul.f32 %v1294_v59, %v132_v60 }
   0xc   :  { %979 = vmatprep.subr.bf16.mxu0 %v1100_v3  ;;  %v1304_v7 = vsel %vm91_vm5, 1.0, %v1102_v55  ;;  %vm104_vm6 = vcmp.lt.s32.totalorder %v66_v62, 15  ;;  %v118_v23 = vsel %vm117_vm3, %v115_v58, %v116_v51  ;;  %v412_v62 = vld [vmem:[%s1634_s4 + $0x80] sm:$0xff] }
   0xd   :  { %v119_v9 = vsel %vm117_vm3, %v114_v63, %v115_v58  ;;  %v120_v11 = vsel %vm117_vm3, %v113_v50, %v114_v63  ;;  %v1315_v17 = vsel %vm104_vm6, 1.0, %v1102_v55  ;;  %v413_v63 = vld [vmem:[%s1634_s4 + $0x88] sm:$0xff] }
   0xe   :  { %v124_v14 = vmul.f32 %v1304_v7, %v119_v9 }
   0xf   :  { %981 = vmatpush1.bf16.msra.mxu0 %v980_v18 }
  0x10   :  { %982 = vmatprep.subr.bf16.mxu0 %v1100_v3 }
  0x13   :  { %984 = vmatpush1.bf16.msra.mxu0 %v983_v21 }
  0x14   :  { %985 = vmatprep.subr.bf16.mxu0 %v1100_v3 }
  0x17   :  { %987 = vmatpush1.bf16.msra.mxu0 %v986_v24 }
  0x18   :  { %988 = vmatprep.subr.bf16.mxu0 %v1100_v3 }
  0x1b   :  { %990 = vmatpush1.bf16.msra.mxu0 %v989_v27 }
  0x1c   :  { %991 = vmatprep.subr.bf16.mxu0 %v1100_v3 }
  0x1f   :  { %993 = vmatpush1.bf16.msra.mxu0 %v992_v30 }
  0x20   :  { %994 = vmatprep.subr.bf16.mxu0 %v1100_v3 }
  0x23   :  { %996 = vmatpush1.bf16.msra.mxu0 %v995_v33 }
  0x24   :  { %997 = vmatprep.subr.bf16.mxu0 %v1100_v3 }
  0x27   :  { %999 = vmatpush1.bf16.msra.mxu0 %v998_v36 }
  0x28   :  { %1000 = vmatprep.subr.bf16.mxu0 %v1100_v3 }
  0x2b   :  { %1002 = vmatpush1.bf16.msra.mxu0 %v1001_v39 }
  0x2c   :  { %1003 = vmatprep.subr.bf16.mxu0 %v1100_v3 }
  0x2f   :  { %1005 = vmatpush1.bf16.msra.mxu0 %v1004_v42 }
  0x30   :  { %1006 = vmatprep.subr.bf16.mxu0 %v1100_v3  ;;  %v129_v3 = vrot.slane %v1183_v6, 1 }
  0x32   :  { %v131_v16 = vsel %vm130_vm1, %v128_v52, %v129_v3  ;;  %v134_v18 = vsel %vm130_vm1, %v129_v3, %v126_v12  ;;  %v396_v3 = vld [vmem:[%s1634_s4] sm:$0xff] }
  0x33   :  { %1008 = vmatpush1.bf16.msra.mxu0 %v1007_v45  ;;  %v138_v21 = vmul.f32 %v1315_v17, %v134_v18  ;;  %v416_v18 = vld [vmem:[%s1634_s4 + $0xa0] sm:$0xff] }
  0x74   :  { %v144_v4 = vpop.permute.xlu0 %143  ;;  %v148_v13 = vpop.permute.xlu1 %147 }
  0x75   :  { %v156_v10 = vsel %vm155_vm0, %v122_v61, %v144_v4  ;;  %v158_v20 = vsel %vm155_vm0, %v124_v14, %v148_v13  ;;  %v397_v4 = vld [vmem:[%s1634_s4 + $0x8] sm:$0xff]  ;;  %v398_v14 = vld [vmem:[%s1634_s4 + $0x10] sm:$0xff] }
  0x76   :  { %261 = vmatmul.mubr.f32.vlgmr.msra.gmra.mrb[0].mxu0 %v156_v10  ;;  %v1011_v9 = vpack.c.bf16 %v397_v4, %v396_v3  ;;  %v414_v10 = vld [vmem:[%s1634_s4 + $0x90] sm:$0xff] }
  0x77   :  { %829 = vmatprep.mubr.msk.f32.mxu0 %vm155_vm0, %v136_v0  ;;  %v1009_v0 = vpack.c.bf16 %v413_v63, %v412_v62 }
  0x78   :  { %v146_v15 = vpop.permute.xlu0 %145  ;;  %v150_v22 = vpop.permute.xlu1 %149 }
  0x79   :  { %v157_v19 = vsel %vm155_vm0, %v120_v11, %v146_v15  ;;  %v159_v24 = vsel %vm155_vm0, %v118_v23, %v150_v22  ;;  %1010 = vmatprep.subr.bf16.mxu1 %v1009_v0  ;;  %v415_v11 = vld [vmem:[%s1634_s4 + $0x98] sm:$0xff]  ;;  %v401_v22 = vld [vmem:[%s1634_s4 + $0x28] sm:$0xff] }
  0x7a   :  { %266 = vmatmul.mubr.f32.gmra.mrb[2].mxu0 %v157_v19  ;;  %1012 = vmatpush3.bf16.msra.mxu1 %v1011_v9  ;;  %v1013_v13 = vpack.c.bf16 %v415_v11, %v414_v10  ;;  %v399_v15 = vld [vmem:[%s1634_s4 + $0x18] sm:$0xff]  ;;  %v417_v19 = vld [vmem:[%s1634_s4 + $0xa8] sm:$0xff] }
  0x7b   :  { %830 = vmatprep.mubr.msk.f32.mxu0 %vm155_vm0, %v131_v16  ;;  %v1015_v16 = vpack.c.bf16 %v399_v15, %v398_v14 }
  0x7c   :  { %1014 = vmatprep.subr.bf16.mxu1 %v1013_v13  ;;  %v1106_v13 = vmov 1966171168  }
  0x7d   :  { %v330_v14 = vunpack.c.l.s4 %v1106_v13  ;;  %v438_v13 = vld [vmem:[%s1634_s4 + $0x150] sm:$0xff] }
  0x7e   :  { %271 = vmatmul.mubr.f32.gmra.mrb[4].mxu0 %v158_v20  ;;  %1016 = vmatpush3.bf16.msra.mxu1 %v1015_v16  ;;  %v1017_v20 = vpack.c.bf16 %v417_v19, %v416_v18 }
  0x7f   :  { %831 = vmatprep.mubr.msk.f32.mxu0 %vm155_vm0, %v138_v21  ;;  %v400_v21 = vld [vmem:[%s1634_s4 + $0x20] sm:$0xff]  ;;  %v331_v15 = vunpack.c.0.s8 %v330_v14 }
  0x80   :  { %v1019_v23 = vpack.c.bf16 %v401_v22, %v400_v21  ;;  %1018 = vmatprep.subr.bf16.mxu1 %v1017_v20  ;;  %v1473_v21 = vsub.s32 0, %v1188_v8 }
  0x81   :  { %v1466_v16 = vsub.s32 %v331_v15, %v1188_v8  ;;  %v440_v15 = vld [vmem:[%s1634_s4 + $0x160] sm:$0xff] }
  0x82   :  { %276 = vmatmul.mubr.f32.gmra.mrb[6].mxu0 %v159_v24  ;;  %1020 = vmatpush3.bf16.msra.mxu1 %v1019_v23  ;;  %v418_v24 = vld [vmem:[%s1634_s4 + $0xb0] sm:$0xff] }
  0x83   :  { %967 = vmatprep.mubr.msk.f32.mxu0 %vm155_vm0, %v1160_v1 }
 0x149   :  { %v1331_v12 = vpop.f32.mrb[0].mxu0 }
 0x14a   :  { %v264_v25 = vpop.f32.mrb[1].mxu0  ;;  %v292_v27 = vmul.f32 %v1331_v12, %v1331_v12 }
 0x14b   :  { %v419_v25 = vld [vmem:[%s1634_s4 + $0xb8] sm:$0xff] }
 0x14d   :  { %v1333_v26 = vpop.f32.mrb[2].mxu0 }
 0x14e   :  { %v283_v28 = vadd.f32 %v1333_v26, %v1331_v12  ;;  %v293_v29 = vmul.f32 %v1333_v26, %v1333_v26  ;;  %v269_v30 = vpop.f32.mrb[3].mxu0 }
 0x150   :  { %v296_v31 = vadd.f32 %v293_v29, %v292_v27  ;;  %v1021_v27 = vpack.c.bf16 %v419_v25, %v418_v24  ;;  %v403_v29 = vld [vmem:[%s1634_s4 + $0x38] sm:$0xff]  ;;  %v282_v24 = vld [vmem:[%s1636_s3] sm:$0x1] }
 0x151   :  { %v1341_v32 = vpop.f32.mrb[4].mxu0 }
 0x152   :  { %v284_v1 = vadd.f32 %v283_v28, %v1341_v32  ;;  %v294_v33 = vmul.f32 %v1341_v32, %v1341_v32  ;;  %v274_v34 = vpop.f32.mrb[5].mxu0  ;;  %v402_v28 = vld [vmem:[%s1634_s4 + $0x30] sm:$0xff]  ;;  %1022 = vmatprep.subr.bf16.mxu1 %v1021_v27 }
 0x153   :  { %v1023_v30 = vpack.c.bf16 %v403_v29, %v402_v28  ;;  %v404_v34 = vld [vmem:[%s1634_s4 + $0x40] sm:$0xff] }
 0x154   :  { %v297_v35 = vadd.f32 %v296_v31, %v294_v33  ;;  %v420_v31 = vld [vmem:[%s1634_s4 + $0xc0] sm:$0xff] }
 0x155   :  { %v1346_v36 = vpop.f32.mrb[6].mxu0  ;;  %1024 = vmatpush3.bf16.msra.mxu1 %v1023_v30 }
 0x156   :  { %v285_v37 = vadd.f32 %v284_v1, %v1346_v36  ;;  %v295_v38 = vmul.f32 %v1346_v36, %v1346_v36  ;;  %v279_v39 = vpop.f32.mrb[7].mxu0  ;;  %v421_v1 = vld [vmem:[%s1634_s4 + $0xc8] sm:$0xff] }
 0x157   :  { %v1025_v33 = vpack.c.bf16 %v421_v1, %v420_v31  ;;  %v423_v39 = vld [vmem:[%s1634_s4 + $0xd8] sm:$0xff] }
 0x158   :  { %v286_v40 = vrot.slane %v285_v37, 4  ;;  %v298_v41 = vadd.f32 %v297_v35, %v295_v38  ;;  %v405_v35 = vld [vmem:[%s1634_s4 + $0x48] sm:$0xff]  ;;  %v422_v38 = vld [vmem:[%s1634_s4 + $0xd0] sm:$0xff] }
 0x159   :  { %1026 = vmatprep.subr.bf16.mxu1 %v1025_v33 }
 0x15a   :  { %v287_v42 = vadd.f32 %v286_v40, %v285_v37  ;;  %v299_v43 = vrot.slane %v298_v41, 4  ;;  %v1027_v37 = vpack.c.bf16 %v405_v35, %v404_v34  ;;  %v1029_v40 = vpack.c.bf16 %v423_v39, %v422_v38 }
 0x15c   :  { %v288_v44 = vrot.slane %v287_v42, 2  ;;  %v300_v45 = vadd.f32 %v299_v43, %v298_v41  ;;  %1028 = vmatpush3.bf16.msra.mxu1 %v1027_v37  ;;  %v406_v41 = vld [vmem:[%s1634_s4 + $0x50] sm:$0xff] }
 0x15d   :  { %1030 = vmatprep.subr.bf16.mxu1 %v1029_v40 }
 0x15e   :  { %v289_v46 = vadd.f32 %v288_v44, %v287_v42  ;;  %v301_v47 = vrot.slane %v300_v45, 2  ;;  %v407_v42 = vld [vmem:[%s1634_s4 + $0x58] sm:$0xff]  ;;  %v424_v44 = vld [vmem:[%s1634_s4 + $0xe0] sm:$0xff] }
 0x15f   :  { %v1031_v43 = vpack.c.bf16 %v407_v42, %v406_v41 }
 0x160   :  { %v290_v48 = vrot.slane %v289_v46, 1  ;;  %v302_v49 = vadd.f32 %v301_v47, %v300_v45  ;;  %v425_v45 = vld [vmem:[%s1634_s4 + $0xe8] sm:$0xff]  ;;  %v408_v47 = vld [vmem:[%s1634_s4 + $0x60] sm:$0xff] }
 0x161   :  { %1032 = vmatpush3.bf16.msra.mxu1 %v1031_v43 }
 0x162   :  { %v303_v50 = vrot.slane %v302_v49, 1  ;;  %v291_v51 = vadd.f32 %v290_v48, %v289_v46  ;;  %v1033_v46 = vpack.c.bf16 %v425_v45, %v424_v44  ;;  %v409_v48 = vld [vmem:[%s1634_s4 + $0x68] sm:$0xff] }
 0x164   :  { %v304_v52 = vadd.f32 %v303_v50, %v302_v49  ;;  %v426_v49 = vld [vmem:[%s1634_s4 + $0xf0] sm:$0xff]  ;;  %v1035_v50 = vpack.c.bf16 %v409_v48, %v408_v47  ;;  %1034 = vmatprep.subr.bf16.mxu1 %v1033_v46 }
 0x166   :  { %v306_v53 = vsel %vm305_vm7, %v291_v51, %v304_v52  ;;  %v427_v51 = vld [vmem:[%s1634_s4 + $0xf8] sm:$0xff]  ;;  %1036 = vmatpush3.bf16.msra.mxu1 %v1035_v50 }
 0x167   :  { %307 = vrot.lane.b32.xlu0 %v306_v53, %s1103_s1  ;;  %v1037_v52 = vpack.c.bf16 %v427_v51, %v426_v49 }
 0x169   :  { %1038 = vmatprep.subr.bf16.mxu1 %v1037_v52 }
 0x1d9   :  { %v308_v54 = vpop.permute.xlu0 %307 }
 0x1da   :  { %v309_v55 = vadd.f32 %v308_v54, %v306_v53  ;;  %v410_v53 = vld [vmem:[%s1634_s4 + $0x70] sm:$0xff]  ;;  %v411_v54 = vld [vmem:[%s1634_s4 + $0x78] sm:$0xff] }
 0x1dc   :  { %310 = vrot.lane.b32.xlu1 %v309_v55, %s1104_s24 }
 0x24e   :  { %v311_v57 = vpop.permute.xlu1 %310 }
 0x24f   :  { %v312_v58 = vadd.f32 %v311_v57, %v309_v55  ;;  %v1039_v55 = vpack.c.bf16 %v411_v54, %v410_v53  ;;  %v428_v57 = vld [vmem:[%s1634_s4 + $0x100] sm:$0xff] }
 0x251   :  { %313 = vrot.lane.b32.xlu0 %v312_v58, %s1105_s25  ;;  %1040 = vmatpush3.bf16.msra.mxu1 %v1039_v55 }
 0x2c3   :  { %v314_v60 = vpop.permute.xlu0 %313 }
 0x2c4   :  { %v1355_v61 = vadd.f32 %v314_v60, %v312_v58  ;;  %v429_v58 = vld [vmem:[%s1634_s4 + $0x108] sm:$0xff] }
 0x2c5   :  { %v1461_v60 = vpack.c.bf16 %v429_v58, %v428_v57  ;;  %v432_v58 = vld [vmem:[%s1634_s4 + $0x120] sm:$0xff] }
 0x2c6   :  { %316 = vrot.lane.b32.xlu1 %v1355_v61, %s1101_s13 }
 0x2c7   :  { %1042 = vmatprep.subr.bf16.mxu1 %v1461_v60 }
 0x338   :  { %v317_v62 = vpop.permute.xlu1 %316 }
 0x339   :  { %v318_v63 = vadd.f32 %v317_v62, %v1355_v61  ;;  %v281_v61 = vld [vmem:[%s1635_s2] sm:$0x1]  ;;  %v433_v62 = vld [vmem:[%s1634_s4 + $0x128] sm:$0xff] }
 0x33b   :  { %v319_v0 = vmul.f32 0.001953125, %v318_v63 }
 0x33d   :  { %v320_v3 = vmul.f32 %v319_v0, %v319_v0 }
 0x33f   :  { %v322_v4 = vrot.slane %v320_v3, 7  ;;  %v434_v3 = vld [vmem:[%s1634_s4 + $0x130] sm:$0xff] }
 0x341   :  { %v324_v9 = vsub.f32 %v319_v0, %v322_v4  ;;  %v435_v4 = vld [vmem:[%s1634_s4 + $0x138] sm:$0xff] }
 0x343   :  { %v325_v10 = vmax.f32 %v324_v9, 0.0  ;;  %v1053_v9 = vpack.c.bf16 %v435_v4, %v434_v3 }
 0x345   :  { %v326_v11 = vadd.f32 1e-05, %v325_v10  ;;  %v437_v10 = vld [vmem:[%s1634_s4 + $0x148] sm:$0xff] }
 0x347   :  { %1096 = vrsqrt.f32 %v326_v11 }
 0x351   :  { %v1097_v18 = vpop.eup %1096 }
 0x352   :  { %v335_v19 = vrot.slane %v1097_v18, %v1466_v16  ;;  %v441_v18 = vld [vmem:[%s1634_s4 + $0x168] sm:$0xff] }
 0x354   :  { %v336_v20 = vcombine.high %v335_v19, %v335_v19  ;;  %v1065_v19 = vpack.c.bf16 %v441_v18, %v440_v15  ;;  %v706_v18 = vld [vmem:[%s1637_s7 + $0x30] sm:$0xff] }
 0x356   :  { %v343_v22 = vrot.slane %v336_v20, %v1466_v16  ;;  %v442_v20 = vld [vmem:[%s1634_s4 + $0x170] sm:$0xff] }
 0x358   :  { %v345_v23 = vmul.f32 %v343_v22, %v281_v61  ;;  %v443_v61 = vld [vmem:[%s1634_s4 + $0x178] sm:$0xff] }
 0x359   :  { %v1069_v22 = vpack.c.bf16 %v443_v61, %v442_v20 }
 0x35a   :  { %v346_v25 = vmul.f32 %v345_v23, %v319_v0  ;;  %v352_v27 = vrot.slane %v345_v23, %v1473_v21  ;;  %v1049_v0 = vpack.c.bf16 %v433_v62, %v432_v58 }
 0x35c   :  { %v347_v28 = vsub.f32 %v282_v24, %v346_v25  ;;  %v354_v29 = vmul.f32 %v352_v27, %v1331_v12  ;;  %v357_v31 = vmul.f32 %v352_v27, %v1346_v36  ;;  %v355_v1 = vmul.f32 %v352_v27, %v1333_v26  ;;  %v430_v12 = vld [vmem:[%s1634_s4 + $0x110] sm:$0xff]  ;;  %v431_v26 = vld [vmem:[%s1634_s4 + $0x118] sm:$0xff] }
 0x35d   :  { %v356_v33 = vmul.f32 %v352_v27, %v1341_v32  ;;  %v1045_v54 = vpack.c.bf16 %v431_v26, %v430_v12 }
 0x35e   :  { %v362_v30 = vrot.slane %v347_v28, %v1473_v21 }
 0x360   :  { %v364_v34 = vadd.f32 %v362_v30, %v354_v29  ;;  %v367_v35 = vadd.f32 %v362_v30, %v357_v31  ;;  %v365_v37 = vadd.f32 %v362_v30, %v355_v1  ;;  %v366_v38 = vadd.f32 %v362_v30, %v356_v33 }
 0x362   :  { %v368_v39 = vmax.f32 %v364_v34, 0.0  ;;  %v371_v40 = vmax.f32 %v367_v35, 0.0  ;;  %v369_v41 = vmax.f32 %v365_v37, 0.0  ;;  %v370_v42 = vmax.f32 %v366_v38, 0.0 }
 0x364   :  { %v372_v43 = vrot.slane %v368_v39, 7  ;;  %508 = vmatprep.mubr.f32.mxu1 %v368_v39  ;;  %v375_v44 = vrot.slane %v371_v40, 7  ;;  %v373_v32 = vrot.slane %v369_v41, 7  ;;  %v374_v36 = vrot.slane %v370_v42, 7 }
 0x365   :  { %v386_v45 = vrot.slane %v370_v42, 1  ;;  %v384_v46 = vrot.slane %v368_v39, 1  ;;  %v385_v47 = vrot.slane %v369_v41, 1  ;;  %v387_v48 = vrot.slane %v371_v40, 1 }
 0x366   :  { %v379_v49 = vsel %vm117_vm3, %v375_v44, %v372_v43  ;;  %v378_v50 = vsel %vm117_vm3, %v372_v43, %v373_v32  ;;  %v377_v51 = vsel %vm117_vm3, %v373_v32, %v374_v36  ;;  %v376_v52 = vsel %vm117_vm3, %v374_v36, %v375_v44 }
 0x367   :  { %v380_v53 = vmul.f32 %v1289_v56, %v379_v49  ;;  %v389_v55 = vsel %vm130_vm1, %v385_v47, %v386_v45  ;;  %v390_v57 = vsel %vm130_vm1, %v384_v46, %v385_v47  ;;  %v388_v63 = vsel %vm130_vm1, %v386_v45, %v387_v48 }
 0x368   :  { %v391_v56 = vsel %vm130_vm1, %v387_v48, %v384_v46  ;;  %v382_v8 = vmul.f32 %v1304_v7, %v377_v51  ;;  %v439_v7 = vld [vmem:[%s1634_s4 + $0x158] sm:$0xff]  ;;  %v393_v23 = vmul.f32 %v1294_v59, %v389_v55 }
 0x369   :  { %509 = vmatmul.mubr.f32.vlgmr.msra.gmra.mrb[0].mxu1 %v380_v53  ;;  %v1061_v14 = vpack.c.bf16 %v439_v7, %v438_v13  ;;  %v395_v24 = vmul.f32 %v1315_v17, %v391_v56  ;;  %v704_v7 = vld [vmem:[%s1637_s7 + $0x20] sm:$0xff] }
 0x36a   :  { %1044 = vmatpush3.bf16.msra.mxu1 %v1461_v60  ;;  %513 = vmatprep.mubr.f32.mxu1 %v369_v41  ;;  %v436_v60 = vld [vmem:[%s1634_s4 + $0x140] sm:$0xff] }
 0x36b   :  { %1046 = vmatprep.subr.bf16.mxu1 %v1045_v54  ;;  %v1057_v11 = vpack.c.bf16 %v437_v10, %v436_v60  ;;  %v702_v60 = vld [vmem:[%s1637_s7 + $0x10] sm:$0xff] }
 0x36d   :  { %514 = vmatmul.mubr.f32.gmra.mrb[2].mxu1 %v378_v50 }
 0x36e   :  { %1048 = vmatpush3.bf16.msra.mxu1 %v1045_v54  ;;  %518 = vmatprep.mubr.f32.mxu1 %v370_v42 }
 0x36f   :  { %1050 = vmatprep.subr.bf16.mxu1 %v1049_v0 }
 0x371   :  { %519 = vmatmul.mubr.f32.gmra.mrb[4].mxu1 %v382_v8  ;;  %v700_v8 = vld [vmem:[%s1637_s7] sm:$0xff] }
 0x372   :  { %1052 = vmatpush3.bf16.msra.mxu1 %v1049_v0  ;;  %523 = vmatprep.mubr.f32.mxu1 %v371_v40 }
 0x373   :  { %1054 = vmatprep.subr.bf16.mxu1 %v1053_v9 }
 0x375   :  { %524 = vmatmul.mubr.f32.gmra.mrb[6].mxu1 %v376_v52 }
 0x376   :  { %1056 = vmatpush3.bf16.msra.mxu1 %v1053_v9  ;;  %945 = vmatprep.mubr.f32.mxu1 %v390_v57  ;;  %v701_v9 = vld [vmem:[%s1637_s7 + $0x8] sm:$0xff] }
 0x377   :  { %1058 = vmatprep.subr.bf16.mxu1 %v1057_v11  ;;  %v1073_v10 = vpack.c.bf16 %v701_v9, %v700_v8 }
 0x379   :  { %1074 = vmatprep.subr.bf16.mxu0 %v1073_v10 }
 0x37a   :  { %1060 = vmatpush3.bf16.msra.mxu1 %v1057_v11  ;;  %v703_v11 = vld [vmem:[%s1637_s7 + $0x18] sm:$0xff]  ;;  %1076 = vmatpush3.bf16.msra.mxu0 %v1073_v10 }
 0x37b   :  { %1062 = vmatprep.subr.bf16.mxu1 %v1061_v14  ;;  %v1077_v13 = vpack.c.bf16 %v703_v11, %v702_v60 }
 0x37d   :  { %1078 = vmatprep.subr.bf16.mxu0 %v1077_v13 }
 0x37e   :  { %1064 = vmatpush3.bf16.msra.mxu1 %v1061_v14  ;;  %v705_v14 = vld [vmem:[%s1637_s7 + $0x28] sm:$0xff]  ;;  %1080 = vmatpush3.bf16.msra.mxu0 %v1077_v13 }
 0x37f   :  { %1066 = vmatprep.subr.bf16.mxu1 %v1065_v19  ;;  %v1081_v15 = vpack.c.bf16 %v705_v14, %v704_v7 }
 0x381   :  { %1082 = vmatprep.subr.bf16.mxu0 %v1081_v15 }
 0x382   :  { %1068 = vmatpush3.bf16.msra.mxu1 %v1065_v19  ;;  %v707_v19 = vld [vmem:[%s1637_s7 + $0x38] sm:$0xff]  ;;  %1084 = vmatpush3.bf16.msra.mxu0 %v1081_v15 }
 0x383   :  { %1070 = vmatprep.subr.bf16.mxu1 %v1069_v22 }
 0x386   :  { %1072 = vmatpush3.bf16.msra.mxu1 %v1069_v22  ;;  %v1085_v22 = vpack.c.bf16 %v707_v19, %v706_v18 }
 0x388   :  { %1086 = vmatprep.subr.bf16.mxu0 %v1085_v22 }
 0x389   :  { %946 = vmatmul.mubr.f32.vlgmr.msra.gmra.mrb[8].mxu1 %v393_v23  ;;  %1088 = vmatpush3.bf16.msra.mxu0 %v1085_v22 }
 0x38a   :  { %948 = vmatprep.mubr.f32.mxu1 %v388_v63 }
 0x38c   :  { %968 = vmatmul.mubr.msk.f32.vlgmr.msra.gmra.mrb[8].mxu0 %vm155_vm0, %v1178_v5 }
 0x38d   :  { %949 = vmatmul.mubr.f32.gmra.mrb[10].mxu1 %v395_v24  ;;  %970 = vmatprep.mubr.msk.f32.mxu0 %vm155_vm0, %v1165_v2 }
 0x390   :  { %971 = vmatmul.mubr.msk.f32.gmra.mrb[10].mxu0 %vm155_vm0, %v1183_v6 }
 0x43c   :  { %v869_v25 = vpop.f32.mrb[0].mxu1 }
 0x43d   :  { %v870_v27 = vpop.f32.mrb[1].mxu1 }
 0x43e   :  { %v871_v28 = vadd.f32 %v870_v27, %v869_v25 }
 0x440   :  { %v872_v29 = vpop.f32.mrb[2].mxu1 }
 0x441   :  { %v873_v30 = vpop.f32.mrb[3].mxu1 }
 0x442   :  { %v874_v31 = vadd.f32 %v873_v30, %v872_v29 }
 0x444   :  { %v875_v1 = vpop.f32.mrb[4].mxu1 }
 0x445   :  { %v876_v33 = vpop.f32.mrb[5].mxu1 }
 0x446   :  { %v877_v34 = vadd.f32 %v876_v33, %v875_v1 }
 0x448   :  { %v878_v35 = vpop.f32.mrb[6].mxu1 }
 0x449   :  { %v879_v37 = vpop.f32.mrb[7].mxu1 }
 0x44a   :  { %v880_v38 = vadd.f32 %v879_v37, %v878_v35 }
 0x45c   :  { %v947_v39 = vpop.f32.mrb[8].mxu1 }
 0x45d   :  { %v1548_v40 = vadd.f32 %v947_v39, %v874_v31  ;;  %v595_v59 = vpop.f32.mrb[9].mxu1 }
 0x45e   :  { %v1550_v41 = vadd.f32 %v871_v28, %v595_v59 }
 0x45f   :  { %v626_v17 = vmul.f32 %v1548_v40, %v1548_v40  ;;  %v969_v28 = vpop.f32.mrb[8].mxu0 }
 0x460   :  { %v625_v42 = vmul.f32 %v1550_v41, %v1550_v41  ;;  %v950_v43 = vpop.f32.mrb[10].mxu1  ;;  %v616_v26 = vadd.f32 %v1548_v40, %v1550_v41  ;;  %v789_v29 = vpop.f32.mrb[9].mxu0 }
 0x461   :  { %v1556_v44 = vadd.f32 %v950_v43, %v880_v38  ;;  %v605_v12 = vpop.f32.mrb[11].mxu1 }
 0x462   :  { %v1560_v32 = vadd.f32 %v877_v34, %v605_v12  ;;  %v629_v36 = vadd.f32 %v626_v17, %v625_v42  ;;  %v614_v17 = vld [vmem:[%s1638_s5] sm:$0x1] }
 0x463   :  { %v628_v47 = vmul.f32 %v1556_v44, %v1556_v44  ;;  %v972_v30 = vpop.f32.mrb[10].mxu0  ;;  %v615_v12 = vld [vmem:[%s1639_s6] sm:$0x1] }
 0x464   :  { %v617_v45 = vadd.f32 %v616_v26, %v1560_v32  ;;  %v627_v46 = vmul.f32 %v1560_v32, %v1560_v32  ;;  %v799_v31 = vpop.f32.mrb[11].mxu0 }
 0x466   :  { %v618_v48 = vadd.f32 %v617_v45, %v1556_v44  ;;  %v630_v49 = vadd.f32 %v629_v36, %v627_v46  ;;  %v832_v46 = vld [vmem:[%s1640_s8] ss:$0 sm:$0xff] }
 0x468   :  { %v619_v50 = vrot.slane %v618_v48, 4  ;;  %v631_v51 = vadd.f32 %v630_v49, %v628_v47  ;;  %v800_v49 = vadd.f32 %v832_v46, %v799_v31 }
 0x46a   :  { %v620_v52 = vadd.f32 %v619_v50, %v618_v48  ;;  %v632_v53 = vrot.slane %v631_v51, 4  ;;  %v805_v48 = vadd.f32 %v972_v30, %v832_v46 }
 0x46c   :  { %v621_v54 = vrot.slane %v620_v52, 2  ;;  %v633_v55 = vadd.f32 %v632_v53, %v631_v51  ;;  %v795_v53 = vadd.f32 %v969_v28, %v832_v46 }
 0x46e   :  { %v622_v57 = vadd.f32 %v621_v54, %v620_v52  ;;  %v634_v58 = vrot.slane %v633_v55, 2  ;;  %v790_v54 = vadd.f32 %v832_v46, %v789_v29 }
 0x470   :  { %v623_v62 = vrot.slane %v622_v57, 1  ;;  %v635_v63 = vadd.f32 %v634_v58, %v633_v55 }
 0x472   :  { %v636_v56 = vrot.slane %v635_v63, 1  ;;  %v624_v0 = vadd.f32 %v623_v62, %v622_v57 }
 0x474   :  { %v637_v3 = vadd.f32 %v636_v56, %v635_v63 }
 0x476   :  { %v638_v4 = vsel %vm305_vm7, %v624_v0, %v637_v3 }
 0x477   :  { %639 = vrot.lane.b32.xlu0 %v638_v4, %s1103_s1 }
 0x4e9   :  { %v640_v20 = vpop.permute.xlu0 %639 }
 0x4ea   :  { %v641_v61 = vadd.f32 %v640_v20, %v638_v4 }
 0x4ec   :  { %642 = vrot.lane.b32.xlu1 %v641_v61, %s1104_s24 }
 0x55e   :  { %v643_v23 = vpop.permute.xlu1 %642 }
 0x55f   :  { %v644_v24 = vadd.f32 %v643_v23, %v641_v61 }
 0x561   :  { %645 = vrot.lane.b32.xlu0 %v644_v24, %s1105_s25 }
 0x5d3   :  { %v646_v25 = vpop.permute.xlu0 %645 }
 0x5d4   :  { %v647_v27 = vadd.f32 %v646_v25, %v644_v24 }
 0x5d6   :  { %648 = vrot.lane.b32.xlu1 %v647_v27, %s1101_s13 }
 0x648   :  { %v649_v1 = vpop.permute.xlu1 %648 }
 0x649   :  { %v650_v5 = vadd.f32 %v649_v1, %v647_v27 }
 0x64b   :  { %v651_v33 = vmul.f32 0.001953125, %v650_v5 }
 0x64d   :  { %v652_v34 = vmul.f32 %v651_v33, %v651_v33 }
 0x64f   :  { %v654_v2 = vrot.slane %v652_v34, 7 }
 0x651   :  { %v656_v35 = vsub.f32 %v651_v33, %v654_v2 }
 0x653   :  { %v657_v37 = vmax.f32 %v656_v35, 0.0 }
 0x655   :  { %v658_v6 = vadd.f32 1e-05, %v657_v37 }
 0x657   :  { %1098 = vrsqrt.f32 %v658_v6 }
 0x661   :  { %v1099_v38 = vpop.eup %1098 }
 0x662   :  { %v667_v39 = vrot.slane %v1099_v38, %v1466_v16 }
 0x664   :  { %v668_v59 = vcombine.high %v667_v39, %v667_v39 }
 0x666   :  { %v675_v42 = vrot.slane %v668_v59, %v1466_v16 }
 0x668   :  { %v677_v43 = vmul.f32 %v675_v42, %v614_v17 }
 0x66a   :  { %v678_v26 = vmul.f32 %v677_v43, %v651_v33  ;;  %v684_v36 = vrot.slane %v677_v43, %v1473_v21 }
 0x66c   :  { %v679_v45 = vsub.f32 %v615_v12, %v678_v26  ;;  %v687_v47 = vmul.f32 %v684_v36, %v1548_v40  ;;  %v686_v16 = vmul.f32 %v684_v36, %v1550_v41  ;;  %v689_v51 = vmul.f32 %v684_v36, %v1556_v44 }
 0x66d   :  { %v688_v52 = vmul.f32 %v684_v36, %v1560_v32 }
 0x66e   :  { %v694_v50 = vrot.slane %v679_v45, %v1473_v21 }
 0x670   :  { %v697_v55 = vadd.f32 %v694_v50, %v687_v47  ;;  %v696_v57 = vadd.f32 %v694_v50, %v686_v16  ;;  %v699_v58 = vadd.f32 %v694_v50, %v689_v51  ;;  %v698_v62 = vadd.f32 %v694_v50, %v688_v52 }
 0x672   :  { %v809_v63 = vadd.f32 %v795_v53, %v697_v55  ;;  %v808_v56 = vadd.f32 %v790_v54, %v696_v57  ;;  %v811_v0 = vadd.f32 %v805_v48, %v699_v58  ;;  %v810_v40 = vadd.f32 %v800_v49, %v698_v62 }
 0x674   :  { %v813_v3 = vmax.f32 %v809_v63, 0.0  ;;  %v812_v4 = vmax.f32 %v808_v56, 0.0  ;;  %v815_v8 = vmax.f32 %v811_v0, 0.0  ;;  %v814_v21 = vmax.f32 %v810_v40, 0.0 }
 0x676   :  { %817 = vst [vmem:[%s1641_s9 + $0x8] sm:$0xff] %v813_v3  ;;  %816 = vst [vmem:[%s1641_s9] sm:$0xff] %v812_v4 }
 0x677   :  { %819 = vst [vmem:[%s1641_s9 + $0x18] sm:$0xff] %v815_v8  ;;  %818 = vst [vmem:[%s1641_s9 + $0x10] sm:$0xff] %v814_v21 }

</bundles_post_ra>
